<compile_context>
chip_gen: v5e
topology: v5e:2x2
jax: 0.10.0
libtpu: 0.0.40
codegen_flags: <defaults>
</compile_context>

<pallas_src>
import jax
import jax.numpy as jnp
from jax.experimental import pallas as pl
from jax.experimental.pallas import tpu as pltpu


def _round_up(x, m):
    return (x + m - 1) // m * m


def _func_kernel(z_ref, var_ref, o_ref):
    # z_ref:   (TH, 1)   hidden rows on sublanes
    # var_ref: (1, TI)   input cols on lanes (fully resident in the 1-D regime)
    # o_ref:   (TH, TI)  lane-dense output tile
    s = jax.nn.sigmoid(z_ref[...].astype(jnp.float32))     # (TH, 1), EUP
    v = var_ref[...].astype(jnp.float32)                    # (1, TI)
    o_ref[...] = (s + v).astype(o_ref.dtype)                # broadcast add -> (TH, TI)


def func_forward(t, z, variable):
    """Pallas equivalent of _Func.forward.  `t` is unused (matches reference)."""
    del t
    hidden_size = z.shape[1]
    input_size = variable.shape[2]
    assert z.shape == (1, hidden_size)
    assert variable.shape == (1, 1, input_size)

    out_dtype = jnp.result_type(z.dtype, variable.dtype)
    itemsize = jnp.dtype(out_dtype).itemsize

    # 2D views: H on sublanes, I on lanes (no padding anywhere).
    z2d = z.reshape(hidden_size, 1)
    v2d = variable.reshape(1, input_size)

    H, I = hidden_size, input_size
    out_bytes = H * I * itemsize

    # ---------------- small-shape fast path: one full-extent block ----------------
    if out_bytes <= 256 * 1024:
        out2d = pl.pallas_call(
            _func_kernel,
            out_shape=jax.ShapeDtypeStruct((H, I), out_dtype),
            grid=(1,),
            in_specs=[
                pl.BlockSpec((H, 1), lambda i: (0, 0)),
                pl.BlockSpec((1, I), lambda i: (0, 0)),
            ],
            out_specs=pl.BlockSpec((H, I), lambda i: (0, 0)),
        )(z2d, v2d)
        return out2d.reshape(1, H, I)

    # Sublane alignment depends on packing (8 rows for 32-bit, 16 for 16-bit, ...).
    sublane = 8 * max(1, 4 // itemsize)
    max_block_bytes = 4 << 20          # ~4 MiB output block; 2x-buffered fits v5e/v7x
    row_bytes = I * itemsize

    if sublane * row_bytes <= max_block_bytes:
        # ------------- main regime: 1-D grid over H, full-width row bands -------------
        rows_budget = max(sublane, (max_block_bytes // row_bytes) // sublane * sublane)
        TH = min(_round_up(H, sublane), rows_budget, 1024)
        grid = (pl.cdiv(H, TH),)

        cost = pl.CostEstimate(
            flops=H * I,                       # one add per output element
            transcendentals=H,                 # one sigmoid per hidden row
            bytes_accessed=H * I * itemsize
            + H * jnp.dtype(z2d.dtype).itemsize
            + I * jnp.dtype(v2d.dtype).itemsize,
        )

        out2d = pl.pallas_call(
            _func_kernel,
            out_shape=jax.ShapeDtypeStruct((H, I), out_dtype),
            grid=grid,
            in_specs=[
                pl.BlockSpec((TH, 1), lambda i: (i, 0)),   # row band of z (tiny DMA)
                pl.BlockSpec((1, I), lambda i: (0, 0)),    # `variable` fully resident
            ],
            out_specs=pl.BlockSpec((TH, I), lambda i: (i, 0)),
            compiler_params=pltpu.CompilerParams(
                dimension_semantics=("parallel",),         # shard row bands across TCs
            ),
            cost_estimate=cost,
        )(z2d, v2d)
    else:
        # --------- fallback for extremely wide I: 2-D tiling, lane-aligned TI ---------
        TH = min(_round_up(H, sublane), 512)
        TI = min(_round_up(I, 128), 2048)
        grid = (pl.cdiv(H, TH), pl.cdiv(I, TI))

        cost = pl.CostEstimate(
            flops=H * I,
            transcendentals=H * grid[1],       # sigmoid recomputed per column tile
            bytes_accessed=H * I * itemsize
            + H * jnp.dtype(z2d.dtype).itemsize * grid[1]
            + I * jnp.dtype(v2d.dtype).itemsize,
        )

        out2d = pl.pallas_call(
            _func_kernel,
            out_shape=jax.ShapeDtypeStruct((H, I), out_dtype),
            grid=grid,
            in_specs=[
                pl.BlockSpec((TH, 1), lambda i, j: (i, 0)),
                pl.BlockSpec((1, TI), lambda i, j: (0, j)),
            ],
            out_specs=pl.BlockSpec((TH, TI), lambda i, j: (i, j)),
            compiler_params=pltpu.CompilerParams(
                dimension_semantics=("parallel", "parallel"),
            ),
            cost_estimate=cost,
        )(z2d, v2d)

    return out2d.reshape(1, H, I)


if __name__ == "__main__":
    key = jax.random.PRNGKey(0)
    k_var, k_z, k_var2, k_z2 = jax.random.split(key, 4)

    # --- small shape from the reference module (fast path) ---
    input_size = 32
    hidden_size = 8
    variable = jax.random.uniform(k_var, (1, 1, input_size), dtype=jnp.float32)
    t = jnp.float32(0.0)  # unused, as in the reference forward
    z = jax.random.normal(k_z, (1, hidden_size), dtype=jnp.float32)

    out = func_forward(t, z, variable)
    out = jax.block_until_ready(out)
    ref = jax.nn.sigmoid(z)[:, :, None] + variable
    assert out.shape == (1, hidden_size, input_size)
    assert jnp.allclose(out, ref, atol=1e-6, rtol=1e-6)

    # --- larger, tile-unaligned shape exercising the gridded (ragged-edge) path ---
    input_size2 = 384
    hidden_size2 = 200
    variable2 = jax.random.uniform(k_var2, (1, 1, input_size2), dtype=jnp.float32)
    z2 = jax.random.normal(k_z2, (1, hidden_size2), dtype=jnp.float32)

    out2 = func_forward(t, z2, variable2)
    out2 = jax.block_until_ready(out2)
    ref2 = jax.nn.sigmoid(z2)[:, :, None] + variable2
    assert out2.shape == (1, hidden_size2, input_size2)
    assert jnp.allclose(out2, ref2, atol=1e-6, rtol=1e-6)

    print("KERNEL_OK")
</pallas_src>

<mosaic_0001>
module attributes {stable_mosaic.version = 11 : i64} {
  func.func @_func_kernel(%arg0: i32, %arg1: memref<8x1xf32, #tpu.memory_space<vmem>>, %arg2: memref<1x32xf32, #tpu.memory_space<vmem>>, %arg3: memref<8x32xf32, #tpu.memory_space<vmem>>) attributes {dimension_semantics = [#tpu.dimension_semantics<arbitrary>], iteration_bounds = array<i64: 1>, scalar_prefetch = 0 : i64, scratch_operands = 0 : i64, tpu.core_type = #tpu.core_type<tc>, window_params = [{pipeline_mode = #tpu.pipeline_mode<synchronous>, transform_indices = @transform_0, window_bounds = array<i64: 8, 1>}, {pipeline_mode = #tpu.pipeline_mode<synchronous>, transform_indices = @transform_1, window_bounds = array<i64: 1, 32>}, {pipeline_mode = #tpu.pipeline_mode<synchronous>, transform_indices = @transform_2, window_bounds = array<i64: 8, 32>}]} {
    %c0 = arith.constant 0 : index
    %c0_0 = arith.constant 0 : index
    %0 = vector.load %arg1[%c0, %c0_0] : memref<8x1xf32, #tpu.memory_space<vmem>>, vector<8x1xf32>
    %1 = arith.negf %0 : vector<8x1xf32>
    %2 = math.exp %1 : vector<8x1xf32>
    %cst = arith.constant 1.000000e+00 : f32
    %3 = vector.broadcast %cst : f32 to vector<8x1xf32>
    %4 = arith.addf %3, %2 : vector<8x1xf32>
    %5 = arith.divf %3, %4 : vector<8x1xf32>
    %c0_1 = arith.constant 0 : index
    %c0_2 = arith.constant 0 : index
    %6 = vector.load %arg2[%c0_1, %c0_2] : memref<1x32xf32, #tpu.memory_space<vmem>>, vector<1x32xf32>
    %7 = vector.broadcast %5 : vector<8x1xf32> to vector<8x32xf32>
    %8 = vector.broadcast %6 : vector<1x32xf32> to vector<8x32xf32>
    %9 = arith.addf %7, %8 : vector<8x32xf32>
    %c0_3 = arith.constant 0 : index
    %c0_4 = arith.constant 0 : index
    %10 = vector.load %arg3[%c0_3, %c0_4] : memref<8x32xf32, #tpu.memory_space<vmem>>, vector<8x32xf32>
    tpu.vector_store %arg3[%c0_3, %c0_4], %9 {strides = array<i32>} : memref<8x32xf32, #tpu.memory_space<vmem>>, vector<8x32xf32>,
    return
  }
  func.func @transform_0(%arg0: i32) -> (i32, i32) {
    %c0_i32 = arith.constant 0 : i32
    %c0_i32_0 = arith.constant 0 : i32
    %c0_i32_1 = arith.constant 0 : i32
    return %c0_i32, %c0_i32_0 : i32, i32
  }
  func.func @transform_1(%arg0: i32) -> (i32, i32) {
    %c0_i32 = arith.constant 0 : i32
    %c0_i32_0 = arith.constant 0 : i32
    %c0_i32_1 = arith.constant 0 : i32
    return %c0_i32, %c0_i32_0 : i32, i32
  }
  func.func @transform_2(%arg0: i32) -> (i32, i32) {
    %c0_i32 = arith.constant 0 : i32
    %c0_i32_0 = arith.constant 0 : i32
    %c0_i32_1 = arith.constant 0 : i32
    return %c0_i32, %c0_i32_0 : i32, i32
  }
}

</mosaic_0001>

<bundles_post_ra>
// kernel: tpu_custom_call.1
= control target key start
LH: loop header
LB: loop body
LE: loop exit
PB: predicated region body
PF: predicated region fallthrough
CT: control target
= control target key end

     0   :  { %v95_v1 = vmov 0   ;;  %s121_s0 = inlined_call_operand.vmem [shape: f32[8,1], index: 0, kind: input, shape index: {}]   ;;  %s122_s1 = inlined_call_operand.vmem [shape: f32[1,32], index: 1, kind: input, shape index: {}]   ;;  %s123_s2 = inlined_call_operand.hbm [shape: f32[8,32], index: 2, kind: output, shape index: {}]  }
   0x1   :  { %v12_v0 = vld [vmem:[%s121_s0] sm:$0xff]  ;;  %63 = vset.pattern.permute.xlu0 %v95_v1 }
   0x2   :  { %v60_v2 = vmul.f32 -1.442695, %v12_v0 }
   0x3   :  { %7 = vsyncpa [#allocation3], 0  ;;  %v64_v15 = vld [vmem:[%s122_s1] ss:$0 sm:$0xff]  ;;  %s96_s12 = smov [#allocation2]   ;;  %s51_s16 = sshll.u32 %s123_s2, 4  ;;  %s52_s16 = int_to_ptr.hbm [resolvable:$true] %s51_s16 }
   0x4   :  { %65 = vpow2.f32 %v60_v2  ;;  %s49_s13 = sshll.u32 %s96_s12, 4  ;;  %vm42_vm4 = vcmask 261120   ;;  %s50_s13 = int_to_ptr.vmem [resolvable:$true] %s49_s13 }
   0xa   :  { %v66_v3 = vpop.eup %65 }
   0xb   :  { %v16_v4 = vadd.f32 1.0, %v66_v3 }
   0xd   :  { %67 = vrcp.f32 %v16_v4  ;;  %v28_v7 = vand.u32 2147483648, %v16_v4  ;;  %vm22_vm0 = vweird.f32 %v16_v4  ;;  %v26_v9 = vand.u32 2147483647, %v16_v4 }
   0xf   :  { %v29_v11 = vor.u32 1.1754944e-38, %v28_v7  ;;  %vm27_vm3 = vcmp.eq.f32.partialorder %v26_v9, 8.507059e+37 }
  0x13   :  { %v68_v5 = vpop.eup %67 }
  0x14   :  { %v18_v6 = vmul.f32 %v68_v5, %v16_v4  ;;  %vm23_vm1 = vweird.f32 %v68_v5 }
  0x15   :  { %vm24_vm2 = vmor %vm22_vm0, %vm23_vm1 }
  0x16   :  { %v19_v8 = vsub.f32 1.0, %v18_v6 }
  0x18   :  { %v20_v10 = vmul.f32 %v68_v5, %v19_v8 }
  0x1a   :  { %v21_v12 = vadd.f32 %v68_v5, %v20_v10 }
  0x1c   :  { %v25_v13 = vsel %vm24_vm2, %v68_v5, %v21_v12 }
  0x1d   :  { %v30_v14 = vsel %vm27_vm3, %v29_v11, %v25_v13 }
  0x1e   :  { %35 = vperm.xlu0 %63, %v30_v14  }
  0x90   :  { %v36_v16 = vpop.permute.xlu0 %35 }
  0x91   :  { %v41_v17 = vadd.f32 %v64_v15, %v36_v16 }
  0x93   :  { %43 = vst.msk [vmem:[#allocation2] sm:$0xff] %vm42_vm4, %v41_v17 }
  0x94   :  { %54 = dma.vmem_to_hbm [thread:$0]  %s50_s13, 128, %s52_s16, [#allocation3]  }
  0x95   :  { %93 = dma.done.wait [#allocation3], 128  }
  0x96   :  { %94 = vsyncadd [#allocation3], 4294967168 }
  0x97   :  { %59 = vsyncpa [#allocation3], 1 }

</bundles_post_ra>
